<compile_context>
chip_gen: v7x
topology: tpu7x:2x2x1
jax: 0.10.0
libtpu: 0.0.40
codegen_flags: <defaults>
</compile_context>

<pallas_src>
import functools

import jax
import jax.numpy as jnp
from jax.experimental import pallas as pl
from jax.experimental.pallas import tpu as pltpu


_TB_MAX = 256 * 1024   # lanes/tile; 32*TB bytes of double-buffered VMEM = 8 MiB
_TB_MIN = 64 * 1024    # keeps the ~0.35us/step pipeline overhead <10% (v5e floor)


def _round_up(n, m):
    return ((n + m - 1) // m) * m


def _cdiv(a, b):
    return -(-a // b)


def _pick_tb(batch):
    """Batch-tile width: multiple of 128, as large as useful, <= _TB_MAX."""
    b128 = _round_up(max(batch, 1), 128)
    if b128 <= _TB_MAX:
        return b128                      # whole batch fits in one lane-dense tile
    # Large batch: aim for >= 8 grid steps (v7x 2-TC load balance) while each
    # tile stays >= _TB_MIN lanes so per-step overhead remains negligible.
    tb = _round_up(_cdiv(b128, 8), 128)
    return max(_TB_MIN, min(tb, _TB_MAX))


def _batch_dim_semantics(num_tiles):
    """Use CORE_PARALLEL on v7x (2 TCs/chip) when there is work to split."""
    if num_tiles >= 2 and hasattr(pltpu, "CORE_PARALLEL"):
        try:
            kind = jax.devices()[0].device_kind.lower()
        except Exception:
            kind = ""
        if "7" in kind:
            return (pltpu.CORE_PARALLEL,)
    return ("parallel",)


def poly_kernel(w_ref, b_ref, x_ref, o_ref):
    """Lane-dense linear: o[j, :] = sum_k w[j, k] * x[k, :] + b[j].

    w_ref: SMEM (OUT, IN) float32  -- scalar reads, broadcast on the VPU
    b_ref: SMEM (OUT, 1)  float32
    x_ref: VMEM (IN, TB)           -- batch on the lane axis
    o_ref: VMEM (OUT, TB)          -- lane-dense (unmasked) store
    """
    in_f = x_ref.shape[0]
    out_f = o_ref.shape[0]
    for j in range(out_f):                       # static unroll (OUT == 1 here)
        y = x_ref[0, :].astype(jnp.float32) * w_ref[j, 0]
        for k in range(1, in_f):                 # static unroll over 3 features
            y = y + x_ref[k, :].astype(jnp.float32) * w_ref[j, k]
        o_ref[j, :] = (y + b_ref[j, 0]).astype(o_ref.dtype)


@functools.partial(jax.jit, static_argnames=("tb",))
def poly_model_forward(x, weight, bias, tb=None):
    """PyTorch nn.Linear(3, 1): x [B, 3], weight [OUT, 3], bias [OUT] -> [B, OUT]."""
    B, in_f = x.shape
    out_f, in_f_w = weight.shape
    assert in_f == in_f_w, "weight / input feature mismatch"

    tb = _round_up(tb, 128) if tb is not None else _pick_tb(B)

    # Lane-dense layout: batch -> lanes (single wrapper pass).  For B >= tb no
    # jnp.pad is done: Pallas pads the ragged last tile and drops OOB writes.
    x_t = x.T                                        # (in_f, B)
    if B < tb:                                       # tiny batch only: pad to one tile
        x_t = jnp.pad(x_t, ((0, 0), (0, tb - B)))
    b_arr = x_t.shape[1]
    num_tiles = _cdiv(b_arr, tb)

    w_smem = weight.astype(jnp.float32)                   # (out_f, in_f) scalars
    b_smem = bias.reshape(out_f, 1).astype(jnp.float32)   # (out_f, 1)   scalar

    itemsize = jnp.dtype(x.dtype).itemsize
    cost = pl.CostEstimate(
        flops=2 * in_f * out_f * B,
        transcendentals=0,
        bytes_accessed=(in_f + out_f) * itemsize * B,
    )

    out_t = pl.pallas_call(
        poly_kernel,
        out_shape=jax.ShapeDtypeStruct((out_f, b_arr), x.dtype),
        grid=(num_tiles,),
        in_specs=[
            pl.BlockSpec(memory_space=pltpu.MemorySpace.SMEM),   # weight (scalars)
            pl.BlockSpec(memory_space=pltpu.MemorySpace.SMEM),   # bias   (scalar)
            pl.BlockSpec((in_f, tb), lambda i: (0, i)),          # x tile, lane-dense
        ],
        out_specs=pl.BlockSpec((out_f, tb), lambda i: (0, i)),   # lane-dense output
        compiler_params=pltpu.CompilerParams(
            dimension_semantics=_batch_dim_semantics(num_tiles),
        ),
        cost_estimate=cost,
    )(w_smem, b_smem, x_t)

    out = out_t[:, :B]                               # (out_f, B), padded lanes dropped
    # (1, B) -> (B, 1) is a bitcast-compatible reshape (no transpose copy).
    return out.reshape(B, out_f) if out_f == 1 else out.T


if __name__ == "__main__":
    key = jax.random.PRNGKey(0)
    kx, kw, kb = jax.random.split(key, 3)

    B, IN, OUT = 8, 3, 1

    # Deterministic parameter init (mimicking nn.Linear's uniform(-1/sqrt(in), 1/sqrt(in)))
    bound = 1.0 / float(IN) ** 0.5
    weight = jax.random.uniform(kw, (OUT, IN), jnp.float32, -bound, bound)
    bias = jax.random.uniform(kb, (OUT,), jnp.float32, -bound, bound)

    x = jax.random.normal(kx, (B, IN), jnp.float32)

    out = poly_model_forward(x, weight, bias)
    out = jax.block_until_ready(out)

    # Reference check against plain JAX
    ref = x @ weight.T + bias
    assert out.shape == (B, OUT)
    assert jnp.allclose(out, ref, atol=1e-5, rtol=1e-5)

    print("KERNEL_OK")
</pallas_src>

<mosaic_0001>
module attributes {stable_mosaic.version = 11 : i64} {
  func.func @poly_kernel(%arg0: i32, %arg1: memref<1x3xf32, #tpu.memory_space<smem>>, %arg2: memref<1x1xf32, #tpu.memory_space<smem>>, %arg3: memref<3x128xf32, #tpu.memory_space<vmem>>, %arg4: memref<1x128xf32, #tpu.memory_space<vmem>>) attributes {dimension_semantics = [#tpu.dimension_semantics<parallel>], iteration_bounds = array<i64: 1>, scalar_prefetch = 0 : i64, scratch_operands = 0 : i64, tpu.core_type = #tpu.core_type<tc>, window_params = [{transform_indices = @transform_0, window_bounds = array<i64: 1, 3>}, {transform_indices = @transform_1, window_bounds = array<i64: 1, 1>}, {transform_indices = @transform_2, window_bounds = array<i64: 3, 128>}, {transform_indices = @transform_3, window_bounds = array<i64: 1, 128>}]} {
    %c0 = arith.constant 0 : index
    %c0_0 = arith.constant 0 : index
    %0 = vector.load %arg3[%c0, %c0_0] : memref<3x128xf32, #tpu.memory_space<vmem>>, vector<1x128xf32>
    %1 = vector.shape_cast %0 : vector<1x128xf32> to vector<128xf32>
    %c0_1 = arith.constant 0 : index
    %c0_2 = arith.constant 0 : index
    %2 = memref.load %arg1[%c0_1, %c0_2] : memref<1x3xf32, #tpu.memory_space<smem>>
    %3 = vector.broadcast %2 : f32 to vector<128xf32>
    %4 = arith.mulf %1, %3 : vector<128xf32>
    %c1 = arith.constant 1 : index
    %c0_3 = arith.constant 0 : index
    %5 = vector.load %arg3[%c1, %c0_3] : memref<3x128xf32, #tpu.memory_space<vmem>>, vector<1x128xf32>
    %6 = vector.shape_cast %5 : vector<1x128xf32> to vector<128xf32>
    %c0_4 = arith.constant 0 : index
    %c1_5 = arith.constant 1 : index
    %7 = memref.load %arg1[%c0_4, %c1_5] : memref<1x3xf32, #tpu.memory_space<smem>>
    %8 = vector.broadcast %7 : f32 to vector<128xf32>
    %9 = arith.mulf %6, %8 : vector<128xf32>
    %10 = arith.addf %4, %9 : vector<128xf32>
    %c2 = arith.constant 2 : index
    %c0_6 = arith.constant 0 : index
    %11 = vector.load %arg3[%c2, %c0_6] : memref<3x128xf32, #tpu.memory_space<vmem>>, vector<1x128xf32>
    %12 = vector.shape_cast %11 : vector<1x128xf32> to vector<128xf32>
    %c0_7 = arith.constant 0 : index
    %c2_8 = arith.constant 2 : index
    %13 = memref.load %arg1[%c0_7, %c2_8] : memref<1x3xf32, #tpu.memory_space<smem>>
    %14 = vector.broadcast %13 : f32 to vector<128xf32>
    %15 = arith.mulf %12, %14 : vector<128xf32>
    %16 = arith.addf %10, %15 : vector<128xf32>
    %c0_9 = arith.constant 0 : index
    %c0_10 = arith.constant 0 : index
    %17 = memref.load %arg2[%c0_9, %c0_10] : memref<1x1xf32, #tpu.memory_space<smem>>
    %18 = vector.broadcast %17 : f32 to vector<128xf32>
    %19 = arith.addf %16, %18 : vector<128xf32>
    %c0_11 = arith.constant 0 : index
    %c0_12 = arith.constant 0 : index
    %20 = vector.load %arg4[%c0_11, %c0_12] : memref<1x128xf32, #tpu.memory_space<vmem>>, vector<1x128xf32>
    %21 = vector.shape_cast %20 : vector<1x128xf32> to vector<128xf32>
    %22 = vector.shape_cast %19 : vector<128xf32> to vector<1x128xf32>
    tpu.vector_store %arg4[%c0_11, %c0_12], %22 {strides = array<i32>} : memref<1x128xf32, #tpu.memory_space<vmem>>, vector<1x128xf32>,
    return
  }
  func.func @transform_0(%arg0: i32) -> (i32, i32) {
    %c0_i32 = arith.constant 0 : i32
    %c0_i32_0 = arith.constant 0 : i32
    %c0_i32_1 = arith.constant 0 : i32
    return %c0_i32, %c0_i32_0 : i32, i32
  }
  func.func @transform_1(%arg0: i32) -> (i32, i32) {
    %c0_i32 = arith.constant 0 : i32
    %c0_i32_0 = arith.constant 0 : i32
    %c0_i32_1 = arith.constant 0 : i32
    return %c0_i32, %c0_i32_0 : i32, i32
  }
  func.func @transform_2(%arg0: i32) -> (i32, i32) {
    %c0_i32 = arith.constant 0 : i32
    %c0_i32_0 = arith.constant 0 : i32
    return %c0_i32, %arg0 : i32, i32
  }
  func.func @transform_3(%arg0: i32) -> (i32, i32) {
    %c0_i32 = arith.constant 0 : i32
    %c0_i32_0 = arith.constant 0 : i32
    return %c0_i32, %arg0 : i32, i32
  }
}

</mosaic_0001>

<bundles_post_ra>
// kernel: poly_model_forward.1
= control target key start
LH: loop header
LB: loop body
LE: loop exit
PB: predicated region body
PF: predicated region fallthrough
CT: control target
= control target key end

     0   :  { %9 = vsyncpa [#allocation4], 0  ;;  %s107_s0 = inlined_call_operand.vmem [shape: f32[1,3], index: 0, kind: input, shape index: {}]   ;;  %s108_s1 = inlined_call_operand.<no memory space> [shape: f32[1,1], index: 1, kind: input, shape index: {}]   ;;  %s109_s2 = inlined_call_operand.vmem [shape: f32[3,128], index: 2, kind: input, shape index: {}]   ;;  %s110_s3 = inlined_call_operand.vmem [shape: f32[1,128], index: 3, kind: output, shape index: {}]  }
   0x1   :  { %s16_s14 = sshll.u32 %s107_s0, 4  ;;  %s17_s14 = int_to_ptr.vmem [resolvable:$true] %s16_s14 }
   0x2   :  { %s54_s15 = scalar_lea.vmem %s17_s14, 16  ;;  %p59_p1 = scmp.lt.s32.totalorder %s17_s14, %s17_s14 }
   0x3   :  { %p55_p0 = scmp.ne.s32.totalorder %s17_s14, %s54_s15  ;;  %p60_p2 = scmp.lt.s32.totalorder %s54_s15, %s54_s15 }
   0x5   :  { %p61_p3 = por %p60_p2, %p59_p1 }
   0x7   :  { %p62_p4 = pnand %p61_p3, %p55_p0 }
   0x9   :  { %65 = shalt.err (!%p62_p4)
}
   0xa   :  { %s68_s16 = smov [#allocation3]  }
   0xb   :  { %19 = dma.vmem_to_smem %s17_s14, 16, %s68_s16, [#allocation4]  }
   0xc   :  { %66 = dma.done.wait [#allocation4], 16  }
   0xd   :  { %67 = vsyncadd [#allocation4], 4294967280 }
   0xe   :  { %27 = sfence }
   0xf   :  { %s29_s17 = sld [smem:[#allocation3]]  ;;  %s51_s18 = sld [smem:[#allocation3 + $0x1]]  ;;  %v28_v0 = vld [vmem:[%s109_s2] sm:$0x1]  ;;  %v32_v1 = vld [vmem:[%s109_s2 + $0x1] sm:$0x1]  ;;  %v43_v10 = vstv %s108_s1 }
  0x10   :  { %s52_s19 = sld [smem:[#allocation3 + $0x2]]  ;;  %v37_v2 = vld [vmem:[%s109_s2 + $0x2] sm:$0x1] }
  0x15   :  { %v30_v3 = vstv %s29_s17  ;;  %v34_v5 = vstv %s51_s18 }
  0x16   :  { %v31_v4 = vmul.f32 %v30_v3, %v28_v0  ;;  %v39_v6 = vstv %s52_s19  ;;  %v35_v7 = vmul.f32 %v34_v5, %v32_v1 }
  0x17   :  { %v40_v8 = vmul.f32 %v39_v6, %v37_v2 }
  0x18   :  { %v36_v9 = vadd.f32 %v35_v7, %v31_v4 }
  0x1a   :  { %v41_v11 = vadd.f32 %v40_v8, %v36_v9 }
  0x1c   :  { %v44_v12 = vadd.f32 %v43_v10, %v41_v11 }
  0x1e   :  { %45 = vst [vmem:[%s110_s3] sm:$0x1] %v44_v12 }
  0x1f   :  { %50 = vsyncpa [#allocation4], 1 }

</bundles_post_ra>
